<compile_context>
chip_gen: v6e
topology: v6e:2x2x1
jax: 0.10.0
libtpu: 0.0.40
codegen_flags: <defaults>
</compile_context>

<pallas_src>
import functools
import math

import jax
import jax.numpy as jnp
from jax.experimental import pallas as pl
from jax.experimental.pallas import tpu as pltpu

_SQRT2 = math.sqrt(2.0)

_TARGET_BLOCK_BYTES = 4 * 1024 * 1024      # ~4 MiB per block
_VMEM_LIMIT_BYTES = 32 * 1024 * 1024       # explicit scoped-VMEM limit (safe on v5e/v6e/v7x)
_LANE_CANDIDATES = (4096, 2048, 1024, 512, 256, 128)


def _scaled_leaky_relu_kernel(x_ref, o_ref, *, pos_scale, neg_scale):
    # Compute in f32 and cast once on store (free: kernel is HBM-bound).
    x = x_ref[...].astype(jnp.float32)
    o_ref[...] = (x * jnp.where(x >= 0.0, pos_scale, neg_scale)).astype(o_ref.dtype)


def scaled_leaky_relu(x, negative_slope=0.2):
    """Applies ScaledLeakyReLU to a tensor of any shape (e.g. NCHW) via Pallas."""
    orig_shape = x.shape
    dtype = x.dtype
    if not jnp.issubdtype(dtype, jnp.floating):
        raise TypeError(f"scaled_leaky_relu expects a floating dtype, got {dtype}")

    n = x.size
    itemsize = jnp.dtype(dtype).itemsize
    sub = max(8, 32 // itemsize)            # sublane packing: f32 -> 8, bf16/f16 -> 16

    pos_scale = float(_SQRT2)
    neg_scale = float(negative_slope) * float(_SQRT2)

    x_flat = jnp.reshape(x, (-1,))
    main = (n // 128) * 128                 # prefix handled by the kernel
    tail = n - main                         # < 128 leftover elements (rare)

    main_out = None
    if main:
        # Widest lane that divides the prefix and keeps rows >= sublane count.
        lane = 128
        for cand in _LANE_CANDIDATES:
            if main % cand == 0 and (main // cand) >= sub:
                lane = cand
                break
        rows = main // lane
        x2d = jnp.reshape(x_flat[:main] if tail else x_flat, (rows, lane))

        # Large fixed block; ragged final block masked by the cdiv grid.
        block_rows = max(sub, _TARGET_BLOCK_BYTES // (lane * itemsize))
        block_rows = (block_rows // sub) * sub
        # Guarantee >= 2 grid steps when the slab can be split on a sublane
        # boundary, so both v7x TensorCores get work for single-block tensors.
        half_rows = -(-((rows + 1) // 2) // sub) * sub
        if half_rows < rows:
            block_rows = min(block_rows, half_rows)
        else:
            block_rows = rows               # full-dim block (always legal)
        grid = (pl.cdiv(rows, block_rows),)

        kernel = functools.partial(
            _scaled_leaky_relu_kernel, pos_scale=pos_scale, neg_scale=neg_scale
        )

        main_out = pl.pallas_call(
            kernel,
            out_shape=jax.ShapeDtypeStruct((rows, lane), dtype),
            grid_spec=pltpu.PrefetchScalarGridSpec(
                num_scalar_prefetch=0,
                grid=grid,
                in_specs=[pl.BlockSpec((block_rows, lane), lambda i: (i, 0))],
                out_specs=pl.BlockSpec((block_rows, lane), lambda i: (i, 0)),
            ),
            compiler_params=pltpu.CompilerParams(
                dimension_semantics=("parallel",),
                vmem_limit_bytes=_VMEM_LIMIT_BYTES,
            ),
            cost_estimate=pl.CostEstimate(
                flops=2 * main,
                transcendentals=0,
                bytes_accessed=2 * main * itemsize,
            ),
        )(x2d)

    if not tail:
        return jnp.reshape(main_out, orig_shape)

    # Ragged tail (< 128 elems): negligible next to the streamed prefix.
    t = x_flat[main:].astype(jnp.float32)
    tail_out = (t * jnp.where(t >= 0.0, pos_scale, neg_scale)).astype(dtype)
    if main is not None and main > 0:
        out_flat = jnp.concatenate([jnp.reshape(main_out, (-1,)), tail_out])
    else:
        out_flat = tail_out
    return jnp.reshape(out_flat, orig_shape)


def _reference(x, negative_slope=0.2):
    return jnp.where(x >= 0, x, x * negative_slope) * math.sqrt(2.0)


if __name__ == "__main__":
    key = jax.random.PRNGKey(0)

    ok = True

    # float32 cases
    test_shapes = [
        (2, 4, 16, 16),     # primary NCHW case (no tail, single/dual block)
        (2, 3, 17, 19),     # awkward size -> exercises the ragged-tail path
        (4, 8, 128, 144),   # larger -> multi-step grid, >=2 blocks for v7x
    ]
    for shape in test_shapes:
        key, sub_key = jax.random.split(key)
        x = jax.random.normal(sub_key, shape, dtype=jnp.float32)

        out = scaled_leaky_relu(x, negative_slope=0.2)
        jax.block_until_ready(out)

        ref = _reference(x, negative_slope=0.2)
        ok &= out.shape == x.shape and out.dtype == x.dtype
        ok &= bool(jnp.allclose(out, ref, atol=1e-6, rtol=1e-6))
        assert ok, f"mismatch vs reference for shape {shape}"

    # bfloat16 case (kernel computes in f32, casts once on store)
    key, sub_key = jax.random.split(key)
    xb = jax.random.normal(sub_key, (2, 4, 16, 16), dtype=jnp.bfloat16)
    outb = scaled_leaky_relu(xb, negative_slope=0.2)
    jax.block_until_ready(outb)
    refb = _reference(xb.astype(jnp.float32), negative_slope=0.2).astype(jnp.bfloat16)
    ok &= outb.shape == xb.shape and outb.dtype == xb.dtype
    ok &= bool(
        jnp.allclose(outb.astype(jnp.float32), refb.astype(jnp.float32),
                     atol=2e-2, rtol=2e-2)
    )
    assert ok, "mismatch vs reference for bfloat16 case"

    print("KERNEL_OK")
</pallas_src>

<mosaic_0001>
module attributes {stable_mosaic.version = 11 : i64} {
  func.func @_scaled_leaky_relu_kernel(%arg0: i32, %arg1: memref<8x256xf32, #tpu.memory_space<vmem>>, %arg2: memref<8x256xf32, #tpu.memory_space<vmem>>) attributes {dimension_semantics = [#tpu.dimension_semantics<parallel>], iteration_bounds = array<i64: 1>, scalar_prefetch = 0 : i64, scratch_operands = 0 : i64, tpu.core_type = #tpu.core_type<tc>, window_params = [{transform_indices = @transform_0, window_bounds = array<i64: 8, 256>}, {transform_indices = @transform_1, window_bounds = array<i64: 8, 256>}]} {
    %c0 = arith.constant 0 : index
    %c0_0 = arith.constant 0 : index
    %0 = vector.load %arg1[%c0, %c0_0] : memref<8x256xf32, #tpu.memory_space<vmem>>, vector<8x256xf32>
    %cst = arith.constant 0.000000e+00 : f32
    %1 = vector.broadcast %cst : f32 to vector<8x256xf32>
    %2 = arith.cmpf oge, %0, %1 : vector<8x256xf32>
    %cst_1 = arith.constant 1.41421354 : f32
    %cst_2 = arith.constant 0.282842726 : f32
    %3 = vector.broadcast %cst_1 : f32 to vector<8x256xf32>
    %4 = vector.broadcast %cst_2 : f32 to vector<8x256xf32>
    %5 = arith.select %2, %3, %4 : vector<8x256xi1>, vector<8x256xf32>
    %6 = arith.mulf %0, %5 : vector<8x256xf32>
    %c0_3 = arith.constant 0 : index
    %c0_4 = arith.constant 0 : index
    %7 = vector.load %arg2[%c0_3, %c0_4] : memref<8x256xf32, #tpu.memory_space<vmem>>, vector<8x256xf32>
    tpu.vector_store %arg2[%c0_3, %c0_4], %6 {strides = array<i32>} : memref<8x256xf32, #tpu.memory_space<vmem>>, vector<8x256xf32>,
    return
  }
  func.func @transform_0(%arg0: i32) -> (i32, i32) {
    %c0_i32 = arith.constant 0 : i32
    %c0_i32_0 = arith.constant 0 : i32
    return %arg0, %c0_i32 : i32, i32
  }
  func.func @transform_1(%arg0: i32) -> (i32, i32) {
    %c0_i32 = arith.constant 0 : i32
    %c0_i32_0 = arith.constant 0 : i32
    return %arg0, %c0_i32 : i32, i32
  }
}

</mosaic_0001>

<bundles_post_ra>
// kernel: tpu_custom_call.1
= control target key start
LH: loop header
LB: loop body
LE: loop exit
PB: predicated region body
PF: predicated region fallthrough
CT: control target
= control target key end

     0   :  { %6 = vsyncpa [#allocation3], 0  ;;  %s112_s0 = inlined_call_operand.hbm [shape: f32[8,256], index: 0, kind: input, shape index: {}]   ;;  %s113_s1 = inlined_call_operand.hbm [shape: f32[8,256], index: 1, kind: output, shape index: {}]  }
   0x1   :  { %7 = vsyncpa [#allocation4], 0  ;;  %s93_s6 = smov [#allocation2]  }
   0x2   :  { %s14_s7 = sshll.u32 %s93_s6, 4  ;;  %s15_s7 = int_to_ptr.vmem [resolvable:$true] %s14_s7 }
   0x3   :  { %s57_s8 = scalar_lea.vmem %s15_s7, 256  ;;  %p62_p1 = scmp.lt.s32.totalorder %s15_s7, %s15_s7 }
   0x4   :  { %p58_p0 = scmp.ne.s32.totalorder %s15_s7, %s57_s8  ;;  %p63_p2 = scmp.lt.s32.totalorder %s57_s8, %s57_s8 }
   0x6   :  { %p64_p3 = por %p63_p2, %p62_p1 }
   0x8   :  { %p65_p4 = pnand %p64_p3, %p58_p0 }
   0xa   :  { %68 = shalt.err (!%p65_p4)
}
   0xb   :  { %17 = dma.hbm_to_vmem [thread:$0]  %s112_s0, 256, %s15_s7, [#allocation3]  }
   0xc   :  { %89 = dma.done.wait [#allocation3], 256  }
   0xd   :  { %90 = vsyncadd [#allocation3], 4294967040  ;;  %v21_v0 = vld [vmem:[#allocation2] sm:$0xff]  ;;  %v22_v1 = vld [vmem:[#allocation2 + $0x8] sm:$0xff]  ;;  %s94_s11 = smov [#allocation5]  }
   0xe   :  { %s37_s12 = sshll.u32 %s94_s11, 4  ;;  %vm23_vm0 = vcmp.ge.f32.partialorder %v21_v0, 0.0  ;;  %vm24_vm1 = vcmp.ge.f32.partialorder %v22_v1, 0.0  ;;  %v95_v2 = vmov 0.28284273   ;;  %s38_s12 = int_to_ptr.vmem [resolvable:$true] %s37_s12 }
   0xf   :  { %v25_v3 = vsel %vm23_vm0, 1.4142135, %v95_v2  ;;  %v26_v4 = vsel %vm24_vm1, 1.4142135, %v95_v2  ;;  %s69_s13 = scalar_lea.vmem %s38_s12, 256  ;;  %p74_p6 = scmp.lt.s32.totalorder %s38_s12, %s38_s12 }
  0x10   :  { %v27_v5 = vmul.f32 %v25_v3, %v21_v0  ;;  %v28_v6 = vmul.f32 %v26_v4, %v22_v1  ;;  %p70_p5 = scmp.ne.s32.totalorder %s38_s12, %s69_s13  ;;  %p75_p7 = scmp.lt.s32.totalorder %s69_s13, %s69_s13 }
  0x12   :  { %29 = vst [vmem:[#allocation5] sm:$0xff] %v27_v5  ;;  %30 = vst [vmem:[#allocation5 + $0x8] sm:$0xff] %v28_v6  ;;  %p76_p8 = por %p75_p7, %p74_p6 }
  0x14   :  { %p77_p9 = pnand %p76_p8, %p70_p5 }
  0x16   :  { %80 = shalt.err (!%p77_p9)
}
  0x17   :  { %40 = dma.vmem_to_hbm [thread:$0]  %s38_s12, 256, %s113_s1, [#allocation4]  }
  0x18   :  { %91 = dma.done.wait [#allocation4], 256  }
  0x19   :  { %92 = vsyncadd [#allocation4], 4294967040 }
  0x1a   :  { %44 = vsyncpa [#allocation3], 1 }
  0x1b   :  { %45 = vsyncpa [#allocation4], 1 }

</bundles_post_ra>
